<compile_context>
chip_gen: v7x
topology: tpu7x:2x2x1
jax: 0.10.0
libtpu: 0.0.40
codegen_flags: <defaults>
</compile_context>

<pallas_src>
import functools

import jax
import jax.numpy as jnp
from jax.experimental import pallas as pl
from jax.experimental.pallas import tpu as pltpu

SUBLANE = 8


def _round_up(x, m):
    return ((x + m - 1) // m) * m


def _mlp_kernel(n_layers, x_ref, *refs):
    """Fused MLP forward on one batch tile.

    refs = (w0_ref, b0_ref, w1_ref, b1_ref, ..., out_ref).
    Layer i: h = h @ w_i + b_i ; ReLU on all but the last layer.
    """
    out_ref = refs[-1]
    param_refs = refs[:-1]  # 2 * n_layers refs

    h = x_ref[...]
    for i in range(n_layers):
        w = param_refs[2 * i][...]
        b = param_refs[2 * i + 1][...]  # (1, out) broadcasts over the batch tile
        if w.dtype != h.dtype:
            h = h.astype(w.dtype)  # bf16 weight storage path (v6e/v7x); acc stays f32
        h = jnp.dot(h, w, preferred_element_type=jnp.float32) + b.astype(jnp.float32)
        if i < n_layers - 1:
            h = jnp.maximum(h, 0.0)  # ReLU
    out_ref[...] = h.astype(out_ref.dtype)


def _resident_spec(shape):
    """BlockSpec for a parameter that stays resident across grid steps (constant index_map).

    Single-buffered when the installed JAX supports pipeline_mode=pl.Buffered; double-buffering
    a constant-index block buys nothing and doubles its VMEM footprint.
    """
    kwargs = {}
    if hasattr(pl, "Buffered"):
        kwargs["pipeline_mode"] = pl.Buffered(1)
    try:
        return pl.BlockSpec(shape, lambda i: (0, 0), **kwargs)
    except TypeError:
        return pl.BlockSpec(shape, lambda i: (0, 0))


def _mlp_forward(x, weights, biases, *, batch_tile=2048):
    """Run the fused MLP Pallas kernel.

    x:       [batch, n_features] float32
    weights: list of [in_dim, out_dim] (float32 or bfloat16)
    biases:  list of [out_dim] float32
    returns: [batch, n_actions] float32
    """
    n_layers = len(weights)
    batch, n_features = x.shape
    n_actions = weights[-1].shape[1]
    dims = [n_features] + [w.shape[1] for w in weights]

    batch_tile = max(int(batch_tile), SUBLANE)
    if batch <= batch_tile:
        # One fat tile, no batch padding (block dims equal to full array dims are legal).
        tb = batch
        batch_p = batch
    else:
        tb = _round_up(min(batch_tile, batch), SUBLANE)
        batch_p = _round_up(batch, tb)

    xp = x if batch_p == batch else jnp.pad(x, ((0, batch_p - batch), (0, 0)))
    grid = batch_p // tb

    args = [xp]
    in_specs = [pl.BlockSpec((tb, n_features), lambda i: (i, 0))]
    for w, b in zip(weights, biases):
        bp = b.reshape(1, -1)
        args += [w, bp]
        in_specs += [_resident_spec(w.shape), _resident_spec(bp.shape)]

    # Advisory cost estimate from the REAL (unpadded) dims.
    flops = 2 * batch * sum(dims[i] * dims[i + 1] for i in range(n_layers))
    bytes_accessed = (
        batch * n_features * x.dtype.itemsize
        + batch * n_actions * 4
        + sum(int(w.size) * w.dtype.itemsize for w in weights)
        + sum(int(b.size) * 4 for b in biases)
    )

    # Explicit scoped-VMEM limit (v5e default is only 16 MiB; v7x physical is 64 MiB).
    param_vmem = sum(int(w.size) * w.dtype.itemsize for w in weights) + sum(
        int(b.size) * 4 for b in biases
    )
    act_vmem = 2 * 4 * tb * (n_features + n_actions)  # double-buffered in/out tiles
    work_vmem = 2 * 4 * tb * max(dims)  # intermediate activations / matmul operands
    needed = 2 * param_vmem + act_vmem + work_vmem
    vmem_limit = int(min(48 * 1024 * 1024, max(32 * 1024 * 1024, 2 * needed)))

    kernel = functools.partial(_mlp_kernel, n_layers)

    out = pl.pallas_call(
        kernel,
        out_shape=jax.ShapeDtypeStruct((batch_p, n_actions), jnp.float32),
        grid=(grid,),
        in_specs=in_specs,
        out_specs=pl.BlockSpec((tb, n_actions), lambda i: (i, 0)),
        compiler_params=pltpu.CompilerParams(
            # Only shard across TensorCores (v7x megacore) when there are >= 2 batch tiles.
            dimension_semantics=("parallel",) if grid >= 2 else ("arbitrary",),
            vmem_limit_bytes=vmem_limit,
        ),
        cost_estimate=pl.CostEstimate(
            flops=flops, transcendentals=0, bytes_accessed=bytes_accessed
        ),
    )(*args)

    return out if batch_p == batch else out[:batch]


# Jit the whole wrapper so the (rare) batch pad / bias reshape fuse and per-call dispatch
# overhead is one XLA executable.
mlp_forward = jax.jit(_mlp_forward, static_argnames=("batch_tile",))


def init_params(key, n_features, n_actions, hide_list):
    """Deterministic parameter init mirroring nn.Linear shapes (stored as [in, out])."""
    dims = [n_features] + list(hide_list) + [n_actions]
    weights, biases = [], []
    for i in range(len(dims) - 1):
        key, kw, kb = jax.random.split(key, 3)
        bound = 1.0 / jnp.sqrt(dims[i])  # PyTorch-style uniform bound
        w = jax.random.uniform(kw, (dims[i], dims[i + 1]), jnp.float32, -bound, bound)
        b = jax.random.uniform(kb, (dims[i + 1],), jnp.float32, -bound, bound)
        weights.append(w)
        biases.append(b)
    return weights, biases


def reference_forward(x, weights, biases):
    h = x
    for i, (w, b) in enumerate(zip(weights, biases)):
        h = h @ w.astype(jnp.float32) + b
        if i < len(weights) - 1:
            h = jnp.maximum(h, 0.0)
    return h


if __name__ == "__main__":
    # Small config consistent with Network(n_features, n_actions, hide_n, hide_list).
    n_features = 16
    n_actions = 4
    hide_list = [32, 32]

    key = jax.random.PRNGKey(0)
    key, kx1, kx2, kx3 = jax.random.split(key, 4)
    weights, biases = init_params(key, n_features, n_actions, hide_list)

    # Case 1: tiny batch -> one tile, grid=1, no padding anywhere.
    x1 = jax.random.normal(kx1, (8, n_features), jnp.float32)
    out1 = jax.block_until_ready(mlp_forward(x1, weights, biases))
    ref1 = reference_forward(x1, weights, biases)
    assert out1.shape == (8, n_actions)
    assert jnp.allclose(out1, ref1, atol=1e-4, rtol=1e-4), "mismatch vs reference (batch=8)"

    # Case 2: batch not a tile multiple -> multi-step grid + batch padding + parallel axis.
    x2 = jax.random.normal(kx2, (40, n_features), jnp.float32)
    out2 = jax.block_until_ready(mlp_forward(x2, weights, biases, batch_tile=16))
    ref2 = reference_forward(x2, weights, biases)
    assert out2.shape == (40, n_actions)
    assert jnp.allclose(out2, ref2, atol=1e-4, rtol=1e-4), "mismatch vs reference (batch=40)"

    # Case 3: bf16-stored weights (v6e/v7x fast MXU path), f32 accumulation in the kernel.
    weights_bf16 = [w.astype(jnp.bfloat16) for w in weights]
    x3 = jax.random.normal(kx3, (32, n_features), jnp.float32)
    out3 = jax.block_until_ready(mlp_forward(x3, weights_bf16, biases))
    ref3 = reference_forward(x3, weights, biases)
    assert out3.shape == (32, n_actions)
    assert jnp.allclose(out3, ref3, atol=5e-2, rtol=5e-2), "mismatch vs reference (bf16 weights)"

    print("KERNEL_OK")
</pallas_src>

<mosaic_0001>
module attributes {stable_mosaic.version = 11 : i64} {
  func.func @_mlp_kernel(%arg0: i32, %arg1: memref<8x16xf32, #tpu.memory_space<vmem>>, %arg2: memref<16x32xf32, #tpu.memory_space<vmem>>, %arg3: memref<1x32xf32, #tpu.memory_space<vmem>>, %arg4: memref<32x32xf32, #tpu.memory_space<vmem>>, %arg5: memref<1x32xf32, #tpu.memory_space<vmem>>, %arg6: memref<32x4xf32, #tpu.memory_space<vmem>>, %arg7: memref<1x4xf32, #tpu.memory_space<vmem>>, %arg8: memref<8x4xf32, #tpu.memory_space<vmem>>) attributes {dimension_semantics = [#tpu.dimension_semantics<arbitrary>], iteration_bounds = array<i64: 1>, scalar_prefetch = 0 : i64, scratch_operands = 0 : i64, tpu.core_type = #tpu.core_type<tc>, window_params = [{transform_indices = @transform_0, window_bounds = array<i64: 8, 16>}, {pipeline_mode = #tpu.pipeline_mode<synchronous>, transform_indices = @transform_1, window_bounds = array<i64: 16, 32>}, {pipeline_mode = #tpu.pipeline_mode<synchronous>, transform_indices = @transform_2, window_bounds = array<i64: 1, 32>}, {pipeline_mode = #tpu.pipeline_mode<synchronous>, transform_indices = @transform_3, window_bounds = array<i64: 32, 32>}, {pipeline_mode = #tpu.pipeline_mode<synchronous>, transform_indices = @transform_4, window_bounds = array<i64: 1, 32>}, {pipeline_mode = #tpu.pipeline_mode<synchronous>, transform_indices = @transform_5, window_bounds = array<i64: 32, 4>}, {pipeline_mode = #tpu.pipeline_mode<synchronous>, transform_indices = @transform_6, window_bounds = array<i64: 1, 4>}, {transform_indices = @transform_7, window_bounds = array<i64: 8, 4>}]} {
    %c0 = arith.constant 0 : index
    %c0_0 = arith.constant 0 : index
    %0 = vector.load %arg1[%c0, %c0_0] : memref<8x16xf32, #tpu.memory_space<vmem>>, vector<8x16xf32>
    %c0_1 = arith.constant 0 : index
    %c0_2 = arith.constant 0 : index
    %1 = vector.load %arg2[%c0_1, %c0_2] : memref<16x32xf32, #tpu.memory_space<vmem>>, vector<16x32xf32>
    %c0_3 = arith.constant 0 : index
    %c0_4 = arith.constant 0 : index
    %2 = vector.load %arg3[%c0_3, %c0_4] : memref<1x32xf32, #tpu.memory_space<vmem>>, vector<1x32xf32>
    %cst = arith.constant dense<0.000000e+00> : vector<8x32xf32>
    %3 = tpu.matmul %0, %1, %cst {dimension_numbers = #tpu.dot_dimension_numbers<[1], [0], [0], [1], [0, 0, 1, 1], [], []>} : vector<8x16xf32>, vector<16x32xf32>, vector<8x32xf32> -> vector<8x32xf32>
    %4 = vector.broadcast %2 : vector<1x32xf32> to vector<8x32xf32>
    %5 = arith.addf %3, %4 : vector<8x32xf32>
    %cst_5 = arith.constant 0.000000e+00 : f32
    %6 = vector.broadcast %cst_5 : f32 to vector<8x32xf32>
    %7 = arith.maximumf %5, %6 : vector<8x32xf32>
    %c0_6 = arith.constant 0 : index
    %c0_7 = arith.constant 0 : index
    %8 = vector.load %arg4[%c0_6, %c0_7] : memref<32x32xf32, #tpu.memory_space<vmem>>, vector<32x32xf32>
    %c0_8 = arith.constant 0 : index
    %c0_9 = arith.constant 0 : index
    %9 = vector.load %arg5[%c0_8, %c0_9] : memref<1x32xf32, #tpu.memory_space<vmem>>, vector<1x32xf32>
    %cst_10 = arith.constant dense<0.000000e+00> : vector<8x32xf32>
    %10 = tpu.matmul %7, %8, %cst_10 {dimension_numbers = #tpu.dot_dimension_numbers<[1], [0], [0], [1], [0, 0, 1, 1], [], []>} : vector<8x32xf32>, vector<32x32xf32>, vector<8x32xf32> -> vector<8x32xf32>
    %11 = vector.broadcast %9 : vector<1x32xf32> to vector<8x32xf32>
    %12 = arith.addf %10, %11 : vector<8x32xf32>
    %cst_11 = arith.constant 0.000000e+00 : f32
    %13 = vector.broadcast %cst_11 : f32 to vector<8x32xf32>
    %14 = arith.maximumf %12, %13 : vector<8x32xf32>
    %c0_12 = arith.constant 0 : index
    %c0_13 = arith.constant 0 : index
    %15 = vector.load %arg6[%c0_12, %c0_13] : memref<32x4xf32, #tpu.memory_space<vmem>>, vector<32x4xf32>
    %c0_14 = arith.constant 0 : index
    %c0_15 = arith.constant 0 : index
    %16 = vector.load %arg7[%c0_14, %c0_15] : memref<1x4xf32, #tpu.memory_space<vmem>>, vector<1x4xf32>
    %cst_16 = arith.constant dense<0.000000e+00> : vector<8x4xf32>
    %17 = tpu.matmul %14, %15, %cst_16 {dimension_numbers = #tpu.dot_dimension_numbers<[1], [0], [0], [1], [0, 0, 1, 1], [], []>} : vector<8x32xf32>, vector<32x4xf32>, vector<8x4xf32> -> vector<8x4xf32>
    %18 = vector.broadcast %16 : vector<1x4xf32> to vector<8x4xf32>
    %19 = arith.addf %17, %18 : vector<8x4xf32>
    %c0_17 = arith.constant 0 : index
    %c0_18 = arith.constant 0 : index
    %20 = vector.load %arg8[%c0_17, %c0_18] : memref<8x4xf32, #tpu.memory_space<vmem>>, vector<8x4xf32>
    tpu.vector_store %arg8[%c0_17, %c0_18], %19 {strides = array<i32>} : memref<8x4xf32, #tpu.memory_space<vmem>>, vector<8x4xf32>,
    return
  }
  func.func @transform_0(%arg0: i32) -> (i32, i32) {
    %c0_i32 = arith.constant 0 : i32
    %c0_i32_0 = arith.constant 0 : i32
    return %arg0, %c0_i32 : i32, i32
  }
  func.func @transform_1(%arg0: i32) -> (i32, i32) {
    %c0_i32 = arith.constant 0 : i32
    %c0_i32_0 = arith.constant 0 : i32
    %c0_i32_1 = arith.constant 0 : i32
    return %c0_i32, %c0_i32_0 : i32, i32
  }
  func.func @transform_2(%arg0: i32) -> (i32, i32) {
    %c0_i32 = arith.constant 0 : i32
    %c0_i32_0 = arith.constant 0 : i32
    %c0_i32_1 = arith.constant 0 : i32
    return %c0_i32, %c0_i32_0 : i32, i32
  }
  func.func @transform_3(%arg0: i32) -> (i32, i32) {
    %c0_i32 = arith.constant 0 : i32
    %c0_i32_0 = arith.constant 0 : i32
    %c0_i32_1 = arith.constant 0 : i32
    return %c0_i32, %c0_i32_0 : i32, i32
  }
  func.func @transform_4(%arg0: i32) -> (i32, i32) {
    %c0_i32 = arith.constant 0 : i32
    %c0_i32_0 = arith.constant 0 : i32
    %c0_i32_1 = arith.constant 0 : i32
    return %c0_i32, %c0_i32_0 : i32, i32
  }
  func.func @transform_5(%arg0: i32) -> (i32, i32) {
    %c0_i32 = arith.constant 0 : i32
    %c0_i32_0 = arith.constant 0 : i32
    %c0_i32_1 = arith.constant 0 : i32
    return %c0_i32, %c0_i32_0 : i32, i32
  }
  func.func @transform_6(%arg0: i32) -> (i32, i32) {
    %c0_i32 = arith.constant 0 : i32
    %c0_i32_0 = arith.constant 0 : i32
    %c0_i32_1 = arith.constant 0 : i32
    return %c0_i32, %c0_i32_0 : i32, i32
  }
  func.func @transform_7(%arg0: i32) -> (i32, i32) {
    %c0_i32 = arith.constant 0 : i32
    %c0_i32_0 = arith.constant 0 : i32
    return %arg0, %c0_i32 : i32, i32
  }
}

</mosaic_0001>

<bundles_post_ra>
// kernel: _mlp_forward.1
= control target key start
LH: loop header
LB: loop body
LE: loop exit
PB: predicated region body
PF: predicated region fallthrough
CT: control target
= control target key end

     0   :  { %12 = vsyncpa [#allocation3], 0  ;;  %s391_s24 = smov [#allocation2]   ;;  %s492_s0 = inlined_call_operand.hbm [shape: f32[8,16], index: 0, kind: input, shape index: {}]   ;;  %s493_s1 = inlined_call_operand.vmem [shape: f32[16,32], index: 1, kind: input, shape index: {}]   ;;  %s494_s2 = inlined_call_operand.vmem [shape: f32[1,32], index: 2, kind: input, shape index: {}]   ;;  %s495_s3 = inlined_call_operand.vmem [shape: f32[32,32], index: 3, kind: input, shape index: {}]   ;;  %s496_s4 = inlined_call_operand.vmem [shape: f32[1,32], index: 4, kind: input, shape index: {}]   ;;  %s497_s5 = inlined_call_operand.vmem [shape: f32[32,4], index: 5, kind: input, shape index: {}]   ;;  %s498_s6 = inlined_call_operand.vmem [shape: f32[1,4], index: 6, kind: input, shape index: {}]   ;;  %s499_s7 = inlined_call_operand.vmem [shape: f32[8,4], index: 7, kind: output, shape index: {}]  }
   0x1   :  { %s19_s25 = sshll.u32 %s391_s24, 4  ;;  %s367_s28 = scalar_lea.hbm %s492_s0, 128  ;;  %s20_s25 = int_to_ptr.vmem [resolvable:$true] %s19_s25 }
   0x2   :  { %p368_p0 = scmp.ne.s32.totalorder %s492_s0, %s367_s28  ;;  %p371_p1 = scmp.lt.u32.totalorder %s367_s28, %s492_s0 }
   0x4   :  { %p373_p2 = pnand %p371_p1, %p368_p0 }
   0x6   :  { %376 = shalt.err (!%p373_p2)
}
   0x7   :  { %s377_s10 = scalar_lea.vmem %s20_s25, 128  ;;  %p382_p4 = scmp.lt.s32.totalorder %s20_s25, %s20_s25 }
   0x8   :  { %p378_p3 = scmp.ne.s32.totalorder %s20_s25, %s377_s10  ;;  %p383_p5 = scmp.lt.s32.totalorder %s377_s10, %s377_s10 }
   0xa   :  { %p384_p6 = por %p383_p5, %p382_p4 }
   0xc   :  { %p385_p7 = pnand %p384_p6, %p378_p3 }
   0xe   :  { %388 = shalt.err (!%p385_p7)
}
   0xf   :  { %22 = dma.hbm_to_vmem [thread:$0]  %s492_s0, 128, %s20_s25, [#allocation3]  }
  0x10   :  { %389 = dma.done.wait [#allocation3], 128  }
  0x11   :  { %390 = vsyncadd [#allocation3], 4294967168  ;;  %v392_v0 = vmov 0.0|0.0   ;;  %vm393_vm0 = vmmov 0   ;;  %v394_v1 = vmov 0.0   ;;  %v39_v2 = vld [vmem:[%s493_s1] sm:$0xff] }
  0x12   :  { %348 = vmatprep.subr.bf16.mxu0 %v392_v0  ;;  %323 = vmatprep.mubr.msk.f32.mxu0 %vm393_vm0, %v394_v1  ;;  %v40_v3 = vld [vmem:[%s493_s1 + $0x8] sm:$0xff]  ;;  %v123_v5 = vld [vmem:[%s495_s3] sm:$0xff]  ;;  %vm48_vm1 = vcmask 130048   ;;  %v125_v9 = vld [vmem:[%s495_s3 + $0x10] sm:$0xff]  ;;  %vm134_vm2 = vcmask 261120   ;;  %vm293_vm3 = vcmask 31744  }
  0x13   :  { %351 = vmatprep.subr.bf16.mxu1 %v392_v0  ;;  %334 = vmatprep.mubr.msk.f32.mxu1 %vm393_vm0, %v394_v1  ;;  %v349_v4 = vpack.c.bf16 %v40_v3, %v39_v2  ;;  %v124_v6 = vld [vmem:[%s495_s3 + $0x8] sm:$0xff]  ;;  %v38_v8 = vld [vmem:[#allocation2] sm:$0xff]  ;;  %v126_v10 = vld [vmem:[%s495_s3 + $0x18] sm:$0xff] }
  0x14   :  { %v352_v7 = vpack.c.bf16 %v124_v6, %v123_v5  ;;  %v355_v11 = vpack.c.bf16 %v126_v10, %v125_v9  ;;  %v209_v12 = vld [vmem:[%s497_s5] sm:$0xff]  ;;  %v210_v13 = vld [vmem:[%s497_s5 + $0x8] sm:$0xff]  ;;  %v211_v20 = vld [vmem:[%s497_s5 + $0x10] sm:$0xff] }
  0x15   :  { %350 = vmatpush3.bf16.msra.mxu0 %v349_v4  ;;  %v358_v14 = vpack.c.bf16 %v210_v13, %v209_v12  ;;  %v300_v15 = vld [vmem:[%s494_s2] ss:$0 sm:$0xff]  ;;  %v212_v21 = vld [vmem:[%s497_s5 + $0x18] sm:$0xff] }
  0x16   :  { %353 = vmatpush3.bf16.msra.mxu1 %v352_v7  ;;  %357 = vmatprep.subr.bf16.mxu0 %v392_v0  ;;  %v361_v22 = vpack.c.bf16 %v212_v21, %v211_v20  ;;  %v302_v23 = vld [vmem:[%s496_s4] ss:$0 sm:$0xff] }
  0x17   :  { %354 = vmatprep.subr.bf16.mxu1 %v392_v0  ;;  %v304_v28 = vld [vmem:[%s498_s6] ss:$0 sm:$0xff] }
  0x18   :  { %324 = vmatmul.mubr.msk.f32.vlgmr.msra.gmra.mrb[0].mxu0 %vm48_vm1, %v38_v8 }
  0x19   :  { %345 = vmatprep.mubr.msk.f32.mxu0 %vm393_vm0, %v394_v1  ;;  %359 = vmatpush3.bf16.msra.mxu0 %v358_v14 }
  0x1a   :  { %356 = vmatpush3.bf16.msra.mxu1 %v355_v11  ;;  %360 = vmatprep.subr.bf16.mxu0 %v392_v0 }
  0x1d   :  { %362 = vmatpush3.bf16.msra.mxu0 %v361_v22 }
  0xeb   :  { %v118_v16 = vpop.f32.mrb[0].mxu0 }
  0xec   :  { %v119_v17 = vadd.f32 %v300_v15, %v118_v16  ;;  %v325_v18 = vpop.f32.mrb[1].mxu0 }
  0xee   :  { %v122_v19 = vmax.f32 %v119_v17, 0.0 }
  0xf0   :  { %335 = vmatmul.mubr.msk.f32.vlgmr.msra.gmra.mrb[0].mxu1 %vm134_vm2, %v122_v19 }
 0x1c3   :  { %v204_v24 = vpop.f32.mrb[0].mxu1 }
 0x1c4   :  { %v205_v25 = vadd.f32 %v302_v23, %v204_v24  ;;  %v336_v26 = vpop.f32.mrb[1].mxu1 }
 0x1c6   :  { %v208_v27 = vmax.f32 %v205_v25, 0.0 }
 0x1c8   :  { %346 = vmatmul.mubr.msk.f32.vlgmr.msra.gmra.mrb[2].mxu0 %vm134_vm2, %v208_v27 }
 0x29b   :  { %v289_v29 = vpop.f32.mrb[2].mxu0 }
 0x29c   :  { %v290_v30 = vadd.f32 %v304_v28, %v289_v29  ;;  %v347_v31 = vpop.f32.mrb[3].mxu0 }
 0x29e   :  { %294 = vst.msk [vmem:[%s499_s7] sm:$0xff] %vm293_vm3, %v290_v30 }
 0x29f   :  { %299 = vsyncpa [#allocation3], 1 }

</bundles_post_ra>
